<compile_context>
chip_gen: v6e
topology: v6e:2x2x1
jax: 0.10.0
libtpu: 0.0.40
codegen_flags: <defaults>
</compile_context>

<pallas_src>
import functools

import numpy as np
import jax
import jax.numpy as jnp
from jax.experimental import pallas as pl
from jax.experimental.pallas import tpu as pltpu


# ----------------------------------------------------------------------------------
# Kernel bodies
# ----------------------------------------------------------------------------------
def _attend(q, k, v, amask, out_ref, *, n_heads, dh, approx_recip):
    """Scaled dot-product attention on projected activations.

    q: (G, S_q, D) compute dtype (1/sqrt(dh) already folded into the Q projection).
    k, v: (G, S_k, D) compute dtype.  amask: (G, 1, S_k) f32 additive mask.
    Per-head static loop of G-batched rank-3 einsums; the per-head contexts are
    concatenated in registers and out_ref is written exactly once (no scratch, no
    per-head partial stores, no extra VMEM->VMEM copy).
    """
    ctxs = []
    for h in range(n_heads):                       # static; n_heads is small
        lo = h * dh
        qh = q[:, :, lo:lo + dh]                   # (G, S_q, dh)
        kh = k[:, :, lo:lo + dh]                   # (G, S_k, dh)
        vh = v[:, :, lo:lo + dh]                   # (G, S_k, dh)

        s = jnp.einsum("gqd,gkd->gqk", qh, kh,
                       preferred_element_type=jnp.float32)   # (G, S_q, S_k) f32
        s = s + amask                                         # additive mask (broadcast over q)

        m = jnp.max(s, axis=-1, keepdims=True)
        e = jnp.exp(s - m)
        denom = jnp.sum(e, axis=-1, keepdims=True)
        p = e * pl.reciprocal(denom, approx=approx_recip)     # softmax in f32
        # TODO(synk): training-mode attention dropout (p_drop_attn) not implemented.

        ctxs.append(jnp.einsum("gqk,gkd->gqd", p.astype(v.dtype), vh,
                               preferred_element_type=jnp.float32))

    # Single full-width store of the whole output block.
    out_ref[...] = jnp.concatenate(ctxs, axis=-1).astype(out_ref.dtype)


def _mha_general_kernel(q_ref, k_ref, v_ref, amask_ref, wqkv_ref, bqkv_ref, out_ref,
                        *, n_heads, dh, G, S_q, S_k, D, approx_recip):
    """General path (query/key/value may all differ): 3 exact projection matmuls."""
    nq, nk = G * S_q, G * S_k
    cdt = q_ref.dtype

    # Direct projections -- no row-stacking scratch, no discarded cross-term blocks.
    yq = jnp.dot(q_ref[...].reshape(nq, D), wqkv_ref[0],
                 preferred_element_type=jnp.float32) + bqkv_ref[0]
    yk = jnp.dot(k_ref[...].reshape(nk, D), wqkv_ref[1],
                 preferred_element_type=jnp.float32) + bqkv_ref[1]
    yv = jnp.dot(v_ref[...].reshape(nk, D), wqkv_ref[2],
                 preferred_element_type=jnp.float32) + bqkv_ref[2]

    _attend(yq.astype(cdt).reshape(G, S_q, D),
            yk.astype(cdt).reshape(G, S_k, D),
            yv.astype(cdt).reshape(G, S_k, D),
            amask_ref[...], out_ref,
            n_heads=n_heads, dh=dh, approx_recip=approx_recip)


def _mha_self_kernel(x_ref, amask_ref, wcat_ref, bcat_ref, out_ref,
                     *, n_heads, dh, G, S, D, approx_recip):
    """Self-attention fast path: one (n, D) x (D, 3D) matmul, every block used."""
    n = G * S
    cdt = x_ref.dtype

    y = jnp.dot(x_ref[...].reshape(n, D), wcat_ref[...],
                preferred_element_type=jnp.float32) + bcat_ref[...]
    q = y[:, 0:D].astype(cdt).reshape(G, S, D)
    k = y[:, D:2 * D].astype(cdt).reshape(G, S, D)
    v = y[:, 2 * D:3 * D].astype(cdt).reshape(G, S, D)

    _attend(q, k, v, amask_ref[...], out_ref,
            n_heads=n_heads, dh=dh, approx_recip=approx_recip)


# ----------------------------------------------------------------------------------
# Generation-aware sizing helpers
# ----------------------------------------------------------------------------------
def _vmem_capacity_bytes():
    """Physical VMEM capacity; conservative 64 MiB (v7x) fallback if query fails."""
    try:
        cap = getattr(pltpu.get_tpu_info(), "vmem_capacity_bytes", None)
        if cap:
            return int(cap)
    except Exception:
        pass
    return 64 * 1024 * 1024


def _pick_batch_group(B, S_q, S_k, D, in_bytes, vmem_budget):
    """Largest divisor G of B whose per-step working set fits `vmem_budget` while
    keeping the grid extent B//G >= min(B, 4): enough steps for BlockSpec
    double-buffering to hide input DMA, and >= 2 steps so both v7x TensorCores
    get work under dimension_semantics=('parallel',)."""
    def footprint(g):
        nq, nk = g * S_q, g * S_k
        inputs = 2 * in_bytes * (nq + 2 * nk) * D        # double-buffered q/k/v tiles
        weights = 2 * (in_bytes * 3 * D * D + 4 * 3 * D)  # resident weight/bias blocks
        maskb = 2 * 4 * g * S_k
        proj = 4 * (nq + 2 * nk) * D                      # f32 projection results
        scores = 4 * g * S_q * S_k                        # one head's f32 scores
        ctx = 4 * nq * D                                  # f32 concatenated context
        out = 2 * 4 * nq * D                              # double-buffered output tile
        return inputs + weights + maskb + proj + scores + ctx + out

    min_steps = min(B, 4)
    best = 1
    for g in range(1, B + 1):
        if B % g or footprint(g) > vmem_budget:
            continue
        if B // g >= min_steps:
            best = g
    return best


# ----------------------------------------------------------------------------------
# Wrapper
# ----------------------------------------------------------------------------------
def multi_head_attention(query, key, value, params, n_heads, mask=None, *,
                         compute_dtype=jnp.bfloat16):
    """query: [B, S_q, D], key/value: [B, S_k, D].
    mask: optional [B, S_k] (1 = keep, 0 = masked), as in the PyTorch module.
    compute_dtype: dtype for MXU matmul operands (bf16 default; f32 for exactness)."""
    B, S_q, D = query.shape
    S_k = key.shape[1]
    assert D % n_heads == 0
    dh = D // n_heads
    scale = np.float32(1.0 / np.sqrt(dh))

    # Additive mask precomputed once: 0.0 where kept, -1e9 where masked.
    if mask is None:
        add_mask = jnp.zeros((B, 1, S_k), dtype=jnp.float32)
    else:
        add_mask = jnp.where(mask.reshape(B, 1, S_k) == 0,
                             jnp.float32(-1e9), jnp.float32(0.0))

    # Pre-transposed weights (x @ w.T == x @ w_t); 1/sqrt(dh) folded into Q proj (f32).
    wq_t = params["wq"].T * scale
    wk_t = params["wk"].T
    wv_t = params["wv"].T
    bq = params["bq"] * scale
    bk = params["bk"]
    bv = params["bv"]

    f32 = jnp.dtype(compute_dtype) == jnp.dtype(jnp.float32)
    approx_recip = not f32     # approx reciprocal error << bf16 rounding; exact for f32
    in_bytes = jnp.dtype(compute_dtype).itemsize

    # Generation-aware VMEM budgeting (~48 MiB on v7x, ~96 MiB on v5e/v6e).
    vmem_cap = _vmem_capacity_bytes()
    vmem_limit = min(int(0.75 * vmem_cap), 100 * 1024 * 1024)
    G = _pick_batch_group(B, S_q, S_k, D, in_bytes, int(0.75 * vmem_limit))

    cparams = pltpu.CompilerParams(
        dimension_semantics=("parallel",),
        vmem_limit_bytes=vmem_limit,
    )

    if (query is key) and (key is value):
        # ---- Self-attention fast path: single fused (D, 3D) projection ------------
        wcat = jnp.concatenate([wq_t, wk_t, wv_t], axis=1).astype(compute_dtype)
        bcat = jnp.concatenate([bq, bk, bv]).reshape(1, 3 * D).astype(jnp.float32)
        kernel = functools.partial(_mha_self_kernel, n_heads=n_heads, dh=dh,
                                   G=G, S=S_q, D=D, approx_recip=approx_recip)
        return pl.pallas_call(
            kernel,
            out_shape=jax.ShapeDtypeStruct((B, S_q, D), jnp.float32),
            grid_spec=pltpu.PrefetchScalarGridSpec(
                num_scalar_prefetch=0,
                grid=(B // G,),
                in_specs=[
                    pl.BlockSpec((G, S_q, D), lambda b: (b, 0, 0)),
                    pl.BlockSpec((G, 1, S_k), lambda b: (b, 0, 0)),
                    pl.BlockSpec((D, 3 * D), lambda b: (0, 0)),
                    pl.BlockSpec((1, 3 * D), lambda b: (0, 0)),
                ],
                out_specs=pl.BlockSpec((G, S_q, D), lambda b: (b, 0, 0)),
            ),
            compiler_params=cparams,
        )(query.astype(compute_dtype), add_mask, wcat, bcat)

    # ---- General path: 3 direct projection matmuls --------------------------------
    wqkv = jnp.stack([wq_t, wk_t, wv_t]).astype(compute_dtype)          # (3, D, D)
    bqkv = jnp.stack([bq, bk, bv]).reshape(3, 1, D).astype(jnp.float32)  # (3, 1, D)
    kernel = functools.partial(_mha_general_kernel, n_heads=n_heads, dh=dh,
                               G=G, S_q=S_q, S_k=S_k, D=D, approx_recip=approx_recip)
    return pl.pallas_call(
        kernel,
        out_shape=jax.ShapeDtypeStruct((B, S_q, D), jnp.float32),
        grid_spec=pltpu.PrefetchScalarGridSpec(
            num_scalar_prefetch=0,
            grid=(B // G,),
            in_specs=[
                pl.BlockSpec((G, S_q, D), lambda b: (b, 0, 0)),
                pl.BlockSpec((G, S_k, D), lambda b: (b, 0, 0)),
                pl.BlockSpec((G, S_k, D), lambda b: (b, 0, 0)),
                pl.BlockSpec((G, 1, S_k), lambda b: (b, 0, 0)),
                pl.BlockSpec((3, D, D), lambda b: (0, 0, 0)),
                pl.BlockSpec((3, 1, D), lambda b: (0, 0, 0)),
            ],
            out_specs=pl.BlockSpec((G, S_q, D), lambda b: (b, 0, 0)),
        ),
        compiler_params=cparams,
    )(query.astype(compute_dtype), key.astype(compute_dtype),
      value.astype(compute_dtype), add_mask, wqkv, bqkv)


# ----------------------------------------------------------------------------------
# Plain-JAX reference (mirrors the PyTorch forward, dropout = identity)
# ----------------------------------------------------------------------------------
def _reference_mha(query, key, value, params, n_heads, mask=None):
    B, S_q, D = query.shape
    dh = D // n_heads
    q = query @ params["wq"].T + params["bq"]
    k = key @ params["wk"].T + params["bk"]
    v = value @ params["wv"].T + params["bv"]
    q = q.reshape(B, S_q, n_heads, dh).transpose(0, 2, 1, 3)
    k = k.reshape(B, -1, n_heads, dh).transpose(0, 2, 1, 3)
    v = v.reshape(B, -1, n_heads, dh).transpose(0, 2, 1, 3)
    scores = jnp.einsum("bhqd,bhkd->bhqk", q, k) / np.sqrt(dh)
    if mask is not None:
        scores = jnp.where(mask[:, None, None, :] == 0, -1e9, scores)
    attn = jax.nn.softmax(scores, axis=-1)
    h = jnp.einsum("bhqk,bhkd->bhqd", attn, v)
    return h.transpose(0, 2, 1, 3).reshape(B, S_q, D)


if __name__ == "__main__":
    # Small config consistent with the module: dim=32, n_heads=4, seq=8, batch=2.
    B, S, D, H = 2, 8, 32, 4

    key0 = jax.random.PRNGKey(0)
    keys = jax.random.split(key0, 10)

    query = jax.random.normal(keys[0], (B, S, D), dtype=jnp.float32)
    key_in = jax.random.normal(keys[1], (B, S, D), dtype=jnp.float32)
    value = jax.random.normal(keys[2], (B, S, D), dtype=jnp.float32)

    # Deterministic parameter init (nn.Linear(dim, dim): weight (D, D), bias (D,)).
    bound = 1.0 / np.sqrt(D)
    params = {
        "wq": jax.random.uniform(keys[3], (D, D), jnp.float32, -bound, bound),
        "bq": jax.random.uniform(keys[4], (D,), jnp.float32, -bound, bound),
        "wk": jax.random.uniform(keys[5], (D, D), jnp.float32, -bound, bound),
        "bk": jax.random.uniform(keys[6], (D,), jnp.float32, -bound, bound),
        "wv": jax.random.uniform(keys[7], (D, D), jnp.float32, -bound, bound),
        "bv": jax.random.uniform(keys[8], (D,), jnp.float32, -bound, bound),
    }

    # 2-D padding mask [B, S_k] (1 = keep, 0 = masked), as in the PyTorch module.
    mask = jnp.ones((B, S), dtype=jnp.float32).at[1, -2:].set(0.0)

    # 1) General path (distinct q/k/v), bf16 matmul operands.
    out = jax.block_until_ready(
        multi_head_attention(query, key_in, value, params, H, mask=mask))
    ref = _reference_mha(query, key_in, value, params, H, mask=mask)
    np.testing.assert_allclose(np.asarray(out), np.asarray(ref), rtol=2e-2, atol=2e-2)

    # 2) Self-attention fast path (query is key is value), bf16 matmul operands.
    out_self = jax.block_until_ready(
        multi_head_attention(query, query, query, params, H, mask=mask))
    ref_self = _reference_mha(query, query, query, params, H, mask=mask)
    np.testing.assert_allclose(np.asarray(out_self), np.asarray(ref_self),
                               rtol=2e-2, atol=2e-2)

    # 3) Exactness check of the kernel logic with f32 matmul operands.
    out_f32 = jax.block_until_ready(
        multi_head_attention(query, key_in, value, params, H, mask=mask,
                             compute_dtype=jnp.float32))
    np.testing.assert_allclose(np.asarray(out_f32), np.asarray(ref),
                               rtol=1e-5, atol=1e-5)

    print("KERNEL_OK")
</pallas_src>

<mosaic_0001>
module attributes {stable_mosaic.version = 11 : i64} {
  func.func @_mha_general_kernel(%arg0: i32, %arg1: memref<1x8x32xbf16, #tpu.memory_space<vmem>>, %arg2: memref<1x8x32xbf16, #tpu.memory_space<vmem>>, %arg3: memref<1x8x32xbf16, #tpu.memory_space<vmem>>, %arg4: memref<1x1x8xf32, #tpu.memory_space<vmem>>, %arg5: memref<3x32x32xbf16, #tpu.memory_space<vmem>>, %arg6: memref<3x1x32xf32, #tpu.memory_space<vmem>>, %arg7: memref<1x8x32xf32, #tpu.memory_space<vmem>>) attributes {dimension_semantics = [#tpu.dimension_semantics<parallel>], iteration_bounds = array<i64: 2>, scalar_prefetch = 0 : i64, scratch_operands = 0 : i64, tpu.core_type = #tpu.core_type<tc>, window_params = [{transform_indices = @transform_0, window_bounds = array<i64: 1, 8, 32>}, {transform_indices = @transform_1, window_bounds = array<i64: 1, 8, 32>}, {transform_indices = @transform_2, window_bounds = array<i64: 1, 8, 32>}, {transform_indices = @transform_3, window_bounds = array<i64: 1, 1, 8>}, {pipeline_mode = #tpu.pipeline_mode<synchronous>, transform_indices = @transform_4, window_bounds = array<i64: 3, 32, 32>}, {pipeline_mode = #tpu.pipeline_mode<synchronous>, transform_indices = @transform_5, window_bounds = array<i64: 3, 1, 32>}, {transform_indices = @transform_6, window_bounds = array<i64: 1, 8, 32>}]} {
    %c0 = arith.constant 0 : index
    %c0_0 = arith.constant 0 : index
    %c0_1 = arith.constant 0 : index
    %0 = vector.load %arg1[%c0, %c0_0, %c0_1] : memref<1x8x32xbf16, #tpu.memory_space<vmem>>, vector<1x8x32xbf16>
    %1 = vector.shape_cast %0 : vector<1x8x32xbf16> to vector<8x32xbf16>
    %c0_2 = arith.constant 0 : index
    %c0_3 = arith.constant 0 : index
    %c0_4 = arith.constant 0 : index
    %2 = vector.load %arg5[%c0_2, %c0_3, %c0_4] : memref<3x32x32xbf16, #tpu.memory_space<vmem>>, vector<1x32x32xbf16>
    %3 = vector.shape_cast %2 : vector<1x32x32xbf16> to vector<32x32xbf16>
    %cst = arith.constant dense<0.000000e+00> : vector<8x32xf32>
    %4 = tpu.matmul %1, %3, %cst {dimension_numbers = #tpu.dot_dimension_numbers<[1], [0], [0], [1], [0, 0, 1, 1], [], []>} : vector<8x32xbf16>, vector<32x32xbf16>, vector<8x32xf32> -> vector<8x32xf32>
    %c0_5 = arith.constant 0 : index
    %c0_6 = arith.constant 0 : index
    %c0_7 = arith.constant 0 : index
    %5 = vector.load %arg6[%c0_5, %c0_6, %c0_7] : memref<3x1x32xf32, #tpu.memory_space<vmem>>, vector<1x1x32xf32>
    %6 = vector.shape_cast %5 : vector<1x1x32xf32> to vector<1x32xf32>
    %7 = vector.broadcast %6 : vector<1x32xf32> to vector<8x32xf32>
    %8 = arith.addf %4, %7 : vector<8x32xf32>
    %c0_8 = arith.constant 0 : index
    %c0_9 = arith.constant 0 : index
    %c0_10 = arith.constant 0 : index
    %9 = vector.load %arg2[%c0_8, %c0_9, %c0_10] : memref<1x8x32xbf16, #tpu.memory_space<vmem>>, vector<1x8x32xbf16>
    %10 = vector.shape_cast %9 : vector<1x8x32xbf16> to vector<8x32xbf16>
    %c1 = arith.constant 1 : index
    %c0_11 = arith.constant 0 : index
    %c0_12 = arith.constant 0 : index
    %11 = vector.load %arg5[%c1, %c0_11, %c0_12] : memref<3x32x32xbf16, #tpu.memory_space<vmem>>, vector<1x32x32xbf16>
    %12 = vector.shape_cast %11 : vector<1x32x32xbf16> to vector<32x32xbf16>
    %cst_13 = arith.constant dense<0.000000e+00> : vector<8x32xf32>
    %13 = tpu.matmul %10, %12, %cst_13 {dimension_numbers = #tpu.dot_dimension_numbers<[1], [0], [0], [1], [0, 0, 1, 1], [], []>} : vector<8x32xbf16>, vector<32x32xbf16>, vector<8x32xf32> -> vector<8x32xf32>
    %c1_14 = arith.constant 1 : index
    %c0_15 = arith.constant 0 : index
    %c0_16 = arith.constant 0 : index
    %14 = vector.load %arg6[%c1_14, %c0_15, %c0_16] : memref<3x1x32xf32, #tpu.memory_space<vmem>>, vector<1x1x32xf32>
    %15 = vector.shape_cast %14 : vector<1x1x32xf32> to vector<1x32xf32>
    %16 = vector.broadcast %15 : vector<1x32xf32> to vector<8x32xf32>
    %17 = arith.addf %13, %16 : vector<8x32xf32>
    %c0_17 = arith.constant 0 : index
    %c0_18 = arith.constant 0 : index
    %c0_19 = arith.constant 0 : index
    %18 = vector.load %arg3[%c0_17, %c0_18, %c0_19] : memref<1x8x32xbf16, #tpu.memory_space<vmem>>, vector<1x8x32xbf16>
    %19 = vector.shape_cast %18 : vector<1x8x32xbf16> to vector<8x32xbf16>
    %c2 = arith.constant 2 : index
    %c0_20 = arith.constant 0 : index
    %c0_21 = arith.constant 0 : index
    %20 = vector.load %arg5[%c2, %c0_20, %c0_21] : memref<3x32x32xbf16, #tpu.memory_space<vmem>>, vector<1x32x32xbf16>
    %21 = vector.shape_cast %20 : vector<1x32x32xbf16> to vector<32x32xbf16>
    %cst_22 = arith.constant dense<0.000000e+00> : vector<8x32xf32>
    %22 = tpu.matmul %19, %21, %cst_22 {dimension_numbers = #tpu.dot_dimension_numbers<[1], [0], [0], [1], [0, 0, 1, 1], [], []>} : vector<8x32xbf16>, vector<32x32xbf16>, vector<8x32xf32> -> vector<8x32xf32>
    %c2_23 = arith.constant 2 : index
    %c0_24 = arith.constant 0 : index
    %c0_25 = arith.constant 0 : index
    %23 = vector.load %arg6[%c2_23, %c0_24, %c0_25] : memref<3x1x32xf32, #tpu.memory_space<vmem>>, vector<1x1x32xf32>
    %24 = vector.shape_cast %23 : vector<1x1x32xf32> to vector<1x32xf32>
    %25 = vector.broadcast %24 : vector<1x32xf32> to vector<8x32xf32>
    %26 = arith.addf %22, %25 : vector<8x32xf32>
    %27 = arith.truncf %8 : vector<8x32xf32> to vector<8x32xbf16>
    %28 = vector.shape_cast %27 : vector<8x32xbf16> to vector<1x8x32xbf16>
    %29 = arith.truncf %17 : vector<8x32xf32> to vector<8x32xbf16>
    %30 = vector.shape_cast %29 : vector<8x32xbf16> to vector<1x8x32xbf16>
    %31 = arith.truncf %26 : vector<8x32xf32> to vector<8x32xbf16>
    %32 = vector.shape_cast %31 : vector<8x32xbf16> to vector<1x8x32xbf16>
    %c0_26 = arith.constant 0 : index
    %c0_27 = arith.constant 0 : index
    %c0_28 = arith.constant 0 : index
    %33 = vector.load %arg4[%c0_26, %c0_27, %c0_28] : memref<1x1x8xf32, #tpu.memory_space<vmem>>, vector<1x1x8xf32>
    %34 = vector.extract_strided_slice %28 {offsets = [0, 0, 0], sizes = [1, 8, 8], strides = [1, 1, 1]} : vector<1x8x32xbf16> to vector<1x8x8xbf16>
    %35 = vector.extract_strided_slice %30 {offsets = [0, 0, 0], sizes = [1, 8, 8], strides = [1, 1, 1]} : vector<1x8x32xbf16> to vector<1x8x8xbf16>
    %36 = vector.extract_strided_slice %32 {offsets = [0, 0, 0], sizes = [1, 8, 8], strides = [1, 1, 1]} : vector<1x8x32xbf16> to vector<1x8x8xbf16>
    "tpu.trace_start"() <{level = 10 : i32, message = "gqd,gkd->gqk"}> : () -> ()
    %cst_29 = arith.constant dense<0.000000e+00> : vector<1x8x8xf32>
    %37 = tpu.matmul %34, %35, %cst_29 {dimension_numbers = #tpu.dot_dimension_numbers<[2], [2], [1], [1], [0, 0, 0, 1, 1, 1], [0], [0]>} : vector<1x8x8xbf16>, vector<1x8x8xbf16>, vector<1x8x8xf32> -> vector<1x8x8xf32>
    "tpu.trace_stop"() : () -> ()
    %38 = vector.broadcast %33 : vector<1x1x8xf32> to vector<1x8x8xf32>
    %39 = arith.addf %37, %38 : vector<1x8x8xf32>
    %cst_30 = arith.constant dense<0xFF800000> : vector<1x8xf32>
    %40 = vector.multi_reduction <maximumf>, %39, %cst_30 [2] : vector<1x8x8xf32> to vector<1x8xf32>
    %41 = vector.shape_cast %40 : vector<1x8xf32> to vector<1x8x1xf32>
    %42 = vector.broadcast %41 : vector<1x8x1xf32> to vector<1x8x8xf32>
    %43 = arith.subf %39, %42 : vector<1x8x8xf32>
    %44 = math.exp %43 : vector<1x8x8xf32>
    %cst_31 = arith.constant dense<0.000000e+00> : vector<1x8xf32>
    %45 = vector.multi_reduction <add>, %44, %cst_31 [2] : vector<1x8x8xf32> to vector<1x8xf32>
    %46 = vector.shape_cast %45 : vector<1x8xf32> to vector<1x8x1xf32>
    %47 = tpu.reciprocal %46 {approx = true} : vector<1x8x1xf32> -> vector<1x8x1xf32>
    %48 = vector.broadcast %47 : vector<1x8x1xf32> to vector<1x8x8xf32>
    %49 = arith.mulf %44, %48 : vector<1x8x8xf32>
    %50 = arith.truncf %49 : vector<1x8x8xf32> to vector<1x8x8xbf16>
    "tpu.trace_start"() <{level = 10 : i32, message = "gqk,gkd->gqd"}> : () -> ()
    %cst_32 = arith.constant dense<0.000000e+00> : vector<1x8x8xf32>
    %51 = tpu.matmul %50, %36, %cst_32 {dimension_numbers = #tpu.dot_dimension_numbers<[2], [1], [1], [2], [0, 0, 0, 1, 1, 2], [0], [0]>} : vector<1x8x8xbf16>, vector<1x8x8xbf16>, vector<1x8x8xf32> -> vector<1x8x8xf32>
    "tpu.trace_stop"() : () -> ()
    %52 = vector.extract_strided_slice %28 {offsets = [0, 0, 8], sizes = [1, 8, 8], strides = [1, 1, 1]} : vector<1x8x32xbf16> to vector<1x8x8xbf16>
    %53 = vector.extract_strided_slice %30 {offsets = [0, 0, 8], sizes = [1, 8, 8], strides = [1, 1, 1]} : vector<1x8x32xbf16> to vector<1x8x8xbf16>
    %54 = vector.extract_strided_slice %32 {offsets = [0, 0, 8], sizes = [1, 8, 8], strides = [1, 1, 1]} : vector<1x8x32xbf16> to vector<1x8x8xbf16>
    "tpu.trace_start"() <{level = 10 : i32, message = "gqd,gkd->gqk"}> : () -> ()
    %cst_33 = arith.constant dense<0.000000e+00> : vector<1x8x8xf32>
    %55 = tpu.matmul %52, %53, %cst_33 {dimension_numbers = #tpu.dot_dimension_numbers<[2], [2], [1], [1], [0, 0, 0, 1, 1, 1], [0], [0]>} : vector<1x8x8xbf16>, vector<1x8x8xbf16>, vector<1x8x8xf32> -> vector<1x8x8xf32>
    "tpu.trace_stop"() : () -> ()
    %56 = vector.broadcast %33 : vector<1x1x8xf32> to vector<1x8x8xf32>
    %57 = arith.addf %55, %56 : vector<1x8x8xf32>
    %cst_34 = arith.constant dense<0xFF800000> : vector<1x8xf32>
    %58 = vector.multi_reduction <maximumf>, %57, %cst_34 [2] : vector<1x8x8xf32> to vector<1x8xf32>
    %59 = vector.shape_cast %58 : vector<1x8xf32> to vector<1x8x1xf32>
    %60 = vector.broadcast %59 : vector<1x8x1xf32> to vector<1x8x8xf32>
    %61 = arith.subf %57, %60 : vector<1x8x8xf32>
    %62 = math.exp %61 : vector<1x8x8xf32>
    %cst_35 = arith.constant dense<0.000000e+00> : vector<1x8xf32>
    %63 = vector.multi_reduction <add>, %62, %cst_35 [2] : vector<1x8x8xf32> to vector<1x8xf32>
    %64 = vector.shape_cast %63 : vector<1x8xf32> to vector<1x8x1xf32>
    %65 = tpu.reciprocal %64 {approx = true} : vector<1x8x1xf32> -> vector<1x8x1xf32>
    %66 = vector.broadcast %65 : vector<1x8x1xf32> to vector<1x8x8xf32>
    %67 = arith.mulf %62, %66 : vector<1x8x8xf32>
    %68 = arith.truncf %67 : vector<1x8x8xf32> to vector<1x8x8xbf16>
    "tpu.trace_start"() <{level = 10 : i32, message = "gqk,gkd->gqd"}> : () -> ()
    %cst_36 = arith.constant dense<0.000000e+00> : vector<1x8x8xf32>
    %69 = tpu.matmul %68, %54, %cst_36 {dimension_numbers = #tpu.dot_dimension_numbers<[2], [1], [1], [2], [0, 0, 0, 1, 1, 2], [0], [0]>} : vector<1x8x8xbf16>, vector<1x8x8xbf16>, vector<1x8x8xf32> -> vector<1x8x8xf32>
    "tpu.trace_stop"() : () -> ()
    %70 = vector.extract_strided_slice %28 {offsets = [0, 0, 16], sizes = [1, 8, 8], strides = [1, 1, 1]} : vector<1x8x32xbf16> to vector<1x8x8xbf16>
    %71 = vector.extract_strided_slice %30 {offsets = [0, 0, 16], sizes = [1, 8, 8], strides = [1, 1, 1]} : vector<1x8x32xbf16> to vector<1x8x8xbf16>
    %72 = vector.extract_strided_slice %32 {offsets = [0, 0, 16], sizes = [1, 8, 8], strides = [1, 1, 1]} : vector<1x8x32xbf16> to vector<1x8x8xbf16>
    "tpu.trace_start"() <{level = 10 : i32, message = "gqd,gkd->gqk"}> : () -> ()
    %cst_37 = arith.constant dense<0.000000e+00> : vector<1x8x8xf32>
    %73 = tpu.matmul %70, %71, %cst_37 {dimension_numbers = #tpu.dot_dimension_numbers<[2], [2], [1], [1], [0, 0, 0, 1, 1, 1], [0], [0]>} : vector<1x8x8xbf16>, vector<1x8x8xbf16>, vector<1x8x8xf32> -> vector<1x8x8xf32>
    "tpu.trace_stop"() : () -> ()
    %74 = vector.broadcast %33 : vector<1x1x8xf32> to vector<1x8x8xf32>
    %75 = arith.addf %73, %74 : vector<1x8x8xf32>
    %cst_38 = arith.constant dense<0xFF800000> : vector<1x8xf32>
    %76 = vector.multi_reduction <maximumf>, %75, %cst_38 [2] : vector<1x8x8xf32> to vector<1x8xf32>
    %77 = vector.shape_cast %76 : vector<1x8xf32> to vector<1x8x1xf32>
    %78 = vector.broadcast %77 : vector<1x8x1xf32> to vector<1x8x8xf32>
    %79 = arith.subf %75, %78 : vector<1x8x8xf32>
    %80 = math.exp %79 : vector<1x8x8xf32>
    %cst_39 = arith.constant dense<0.000000e+00> : vector<1x8xf32>
    %81 = vector.multi_reduction <add>, %80, %cst_39 [2] : vector<1x8x8xf32> to vector<1x8xf32>
    %82 = vector.shape_cast %81 : vector<1x8xf32> to vector<1x8x1xf32>
    %83 = tpu.reciprocal %82 {approx = true} : vector<1x8x1xf32> -> vector<1x8x1xf32>
    %84 = vector.broadcast %83 : vector<1x8x1xf32> to vector<1x8x8xf32>
    %85 = arith.mulf %80, %84 : vector<1x8x8xf32>
    %86 = arith.truncf %85 : vector<1x8x8xf32> to vector<1x8x8xbf16>
    "tpu.trace_start"() <{level = 10 : i32, message = "gqk,gkd->gqd"}> : () -> ()
    %cst_40 = arith.constant dense<0.000000e+00> : vector<1x8x8xf32>
    %87 = tpu.matmul %86, %72, %cst_40 {dimension_numbers = #tpu.dot_dimension_numbers<[2], [1], [1], [2], [0, 0, 0, 1, 1, 2], [0], [0]>} : vector<1x8x8xbf16>, vector<1x8x8xbf16>, vector<1x8x8xf32> -> vector<1x8x8xf32>
    "tpu.trace_stop"() : () -> ()
    %88 = vector.extract_strided_slice %28 {offsets = [0, 0, 24], sizes = [1, 8, 8], strides = [1, 1, 1]} : vector<1x8x32xbf16> to vector<1x8x8xbf16>
    %89 = vector.extract_strided_slice %30 {offsets = [0, 0, 24], sizes = [1, 8, 8], strides = [1, 1, 1]} : vector<1x8x32xbf16> to vector<1x8x8xbf16>
    %90 = vector.extract_strided_slice %32 {offsets = [0, 0, 24], sizes = [1, 8, 8], strides = [1, 1, 1]} : vector<1x8x32xbf16> to vector<1x8x8xbf16>
    "tpu.trace_start"() <{level = 10 : i32, message = "gqd,gkd->gqk"}> : () -> ()
    %cst_41 = arith.constant dense<0.000000e+00> : vector<1x8x8xf32>
    %91 = tpu.matmul %88, %89, %cst_41 {dimension_numbers = #tpu.dot_dimension_numbers<[2], [2], [1], [1], [0, 0, 0, 1, 1, 1], [0], [0]>} : vector<1x8x8xbf16>, vector<1x8x8xbf16>, vector<1x8x8xf32> -> vector<1x8x8xf32>
    "tpu.trace_stop"() : () -> ()
    %92 = vector.broadcast %33 : vector<1x1x8xf32> to vector<1x8x8xf32>
    %93 = arith.addf %91, %92 : vector<1x8x8xf32>
    %cst_42 = arith.constant dense<0xFF800000> : vector<1x8xf32>
    %94 = vector.multi_reduction <maximumf>, %93, %cst_42 [2] : vector<1x8x8xf32> to vector<1x8xf32>
    %95 = vector.shape_cast %94 : vector<1x8xf32> to vector<1x8x1xf32>
    %96 = vector.broadcast %95 : vector<1x8x1xf32> to vector<1x8x8xf32>
    %97 = arith.subf %93, %96 : vector<1x8x8xf32>
    %98 = math.exp %97 : vector<1x8x8xf32>
    %cst_43 = arith.constant dense<0.000000e+00> : vector<1x8xf32>
    %99 = vector.multi_reduction <add>, %98, %cst_43 [2] : vector<1x8x8xf32> to vector<1x8xf32>
    %100 = vector.shape_cast %99 : vector<1x8xf32> to vector<1x8x1xf32>
    %101 = tpu.reciprocal %100 {approx = true} : vector<1x8x1xf32> -> vector<1x8x1xf32>
    %102 = vector.broadcast %101 : vector<1x8x1xf32> to vector<1x8x8xf32>
    %103 = arith.mulf %98, %102 : vector<1x8x8xf32>
    %104 = arith.truncf %103 : vector<1x8x8xf32> to vector<1x8x8xbf16>
    "tpu.trace_start"() <{level = 10 : i32, message = "gqk,gkd->gqd"}> : () -> ()
    %cst_44 = arith.constant dense<0.000000e+00> : vector<1x8x8xf32>
    %105 = tpu.matmul %104, %90, %cst_44 {dimension_numbers = #tpu.dot_dimension_numbers<[2], [1], [1], [2], [0, 0, 0, 1, 1, 2], [0], [0]>} : vector<1x8x8xbf16>, vector<1x8x8xbf16>, vector<1x8x8xf32> -> vector<1x8x8xf32>
    "tpu.trace_stop"() : () -> ()
    %106 = tpu.concatenate %51, %69, %87, %105 in 2 : vector<1x8x8xf32>, vector<1x8x8xf32>, vector<1x8x8xf32>, vector<1x8x8xf32> -> vector<1x8x32xf32>
    %c0_45 = arith.constant 0 : index
    %c0_46 = arith.constant 0 : index
    %c0_47 = arith.constant 0 : index
    %107 = vector.load %arg7[%c0_45, %c0_46, %c0_47] : memref<1x8x32xf32, #tpu.memory_space<vmem>>, vector<1x8x32xf32>
    tpu.vector_store %arg7[%c0_45, %c0_46, %c0_47], %106 {strides = array<i32>} : memref<1x8x32xf32, #tpu.memory_space<vmem>>, vector<1x8x32xf32>,
    return
  }
  func.func @transform_0(%arg0: i32) -> (i32, i32, i32) {
    %c0_i32 = arith.constant 0 : i32
    %c0_i32_0 = arith.constant 0 : i32
    %c0_i32_1 = arith.constant 0 : i32
    return %arg0, %c0_i32, %c0_i32_0 : i32, i32, i32
  }
  func.func @transform_1(%arg0: i32) -> (i32, i32, i32) {
    %c0_i32 = arith.constant 0 : i32
    %c0_i32_0 = arith.constant 0 : i32
    %c0_i32_1 = arith.constant 0 : i32
    return %arg0, %c0_i32, %c0_i32_0 : i32, i32, i32
  }
  func.func @transform_2(%arg0: i32) -> (i32, i32, i32) {
    %c0_i32 = arith.constant 0 : i32
    %c0_i32_0 = arith.constant 0 : i32
    %c0_i32_1 = arith.constant 0 : i32
    return %arg0, %c0_i32, %c0_i32_0 : i32, i32, i32
  }
  func.func @transform_3(%arg0: i32) -> (i32, i32, i32) {
    %c0_i32 = arith.constant 0 : i32
    %c0_i32_0 = arith.constant 0 : i32
    %c0_i32_1 = arith.constant 0 : i32
    return %arg0, %c0_i32, %c0_i32_0 : i32, i32, i32
  }
  func.func @transform_4(%arg0: i32) -> (i32, i32, i32) {
    %c0_i32 = arith.constant 0 : i32
    %c0_i32_0 = arith.constant 0 : i32
    %c0_i32_1 = arith.constant 0 : i32
    %c0_i32_2 = arith.constant 0 : i32
    return %c0_i32, %c0_i32_0, %c0_i32_1 : i32, i32, i32
  }
  func.func @transform_5(%arg0: i32) -> (i32, i32, i32) {
    %c0_i32 = arith.constant 0 : i32
    %c0_i32_0 = arith.constant 0 : i32
    %c0_i32_1 = arith.constant 0 : i32
    %c0_i32_2 = arith.constant 0 : i32
    return %c0_i32, %c0_i32_0, %c0_i32_1 : i32, i32, i32
  }
  func.func @transform_6(%arg0: i32) -> (i32, i32, i32) {
    %c0_i32 = arith.constant 0 : i32
    %c0_i32_0 = arith.constant 0 : i32
    %c0_i32_1 = arith.constant 0 : i32
    return %arg0, %c0_i32, %c0_i32_0 : i32, i32, i32
  }
}

</mosaic_0001>

<bundles_post_ra>
// kernel: tpu_custom_call.1
= control target key start
LH: loop header
LB: loop body
LE: loop exit
PB: predicated region body
PF: predicated region fallthrough
CT: control target
= control target key end

     0   :  { %s2000_s0 = inlined_call_operand.hbm [shape: bf16[2,8,32], index: 0, kind: input, shape index: {}]   ;;  %s2001_s1 = inlined_call_operand.hbm [shape: bf16[2,8,32], index: 1, kind: input, shape index: {}]   ;;  %s2002_s2 = inlined_call_operand.hbm [shape: bf16[2,8,32], index: 2, kind: input, shape index: {}]   ;;  %s2003_s3 = inlined_call_operand.vmem [shape: f32[2,1,8], index: 3, kind: input, shape index: {}]   ;;  %s2004_s4 = inlined_call_operand.hbm [shape: bf16[3,32,32], index: 4, kind: input, shape index: {}]   ;;  %s2005_s5 = inlined_call_operand.vmem [shape: f32[3,1,32], index: 5, kind: input, shape index: {}]   ;;  %s2006_s6 = inlined_call_operand.hbm [shape: f32[2,8,32], index: 6, kind: output, shape index: {}]  }
   0x1   :  { %2021 = sst [smem:[#allocation21_spill]] %s2001_s1 }
   0x2   :  { %2022 = sst [smem:[#allocation22_spill]] %s2006_s6 }
   0x3   :  { %11 = vsyncpa [#allocation3], 0 }
   0x4   :  { %13 = vsyncpa [#allocation3 + $0x1], 0 }
   0x5   :  { %14 = vsyncpa [#allocation6], 0 }
   0x6   :  { %16 = vsyncpa [#allocation6 + $0x1], 0 }
   0x7   :  { %17 = vsyncpa [#allocation9], 0 }
   0x8   :  { %18 = vsyncpa [#allocation4], 0 }
   0x9   :  { %20 = vsyncpa [#allocation4 + $0x1], 0  ;;  %s1660_s21 = smov 0   ;;  %s1662_s22 = smov 0  }
   0xa   :  { %s1664_s23 = smov 0   ;;  %s1666_s24 = smov 0  }
   0xb LB: > { %2023 = sst [smem:[#allocation15_spill]] %s1596_s21  ;;  %s1681_s25 = sadd.s32 1, %s1608_s24   ;;  %s1608_s24 = sphi %s1666_s24, %s2051_s24   ;;  %s1604_s23 = sphi %s1664_s23, %s2055_s23   ;;  %s1600_s22 = sphi %s1662_s22, %s2054_s22   ;;  %s1596_s21 = sphi %s1660_s21, %s2053_s21  }
   0xc   : > { %2024 = sst [smem:[#allocation16_spill]] %s1608_s24  ;;  %s33_s26 = sadd.s32 1, %s1604_s23 }
   0xd   : > { %2025 = sst [smem:[#allocation17_spill]] %s1681_s25  ;;  %s30_s27 = ssub.s32 %s1608_s24, %s1681_s25 }
   0xe   : > { %p2007_p0 = scmp.ne.s32.totalorder %s1604_s23, %s1600_s22  ;;  %p31_p1 = scmp.eq.s32.totalorder %s30_s27, 0 }
   0xf   : > { %p41_p2 = scmp.eq.s32.totalorder %s1608_s24, 0  ;;  %p1358_p4 = scmp.lt.s32.totalorder %s1608_s24, 2 }
  0x10   : > { %s1692_s28 = scalar_select %p31_p1, %s1604_s23, %s33_s26  }
  0x11   : > { %p42_p5 = por %p41_p2, %p2007_p0  ;;  %s2008_s29 = sand.u32 1, %s1604_s23  }
  0x12   : > { %2026 = sst [smem:[#allocation18_spill]] %s1692_s28  ;;  %s1700_s30 = sshll.u32 %s2008_s29, 2 }
  0x13   : > { %s1703_s7 = sshll.u32 %s1608_s24, 6  ;;  %p1705_p6 = pnand %p1358_p4, %p42_p5 }
  0x14   : > { %s250_s9 = sand.u32 1, %s1608_s24   ;;  %s2028_s1 = sld [smem:[#allocation21_spill]] }
  0x15   : > { %s254_s13 = scalar_lea.vmem [#allocation5], %s1700_s30  ;;  %s1717_s15 = scalar_lea.sflag [#allocation6], %s250_s9 }
  0x16   : > { %s261_s14 = sshll.u32 %s254_s13, 4  ;;  %p1723_p8 = pneg %p1705_p6  ;;  %s262_s14 = int_to_ptr.vmem [resolvable:$true] %s261_s14 }
  0x1a   : > { %s1714_s12 = scalar_lea.hbm %s2028_s1, %s1703_s7  ;;  %s1431_s20 = scalar_lea.hbm %s2028_s1, 128 }
  0x1b   : > { %s1426_s16 = scalar_lea.hbm %s1714_s12, 64  ;;  %p1432_p11 = scmp.lt.s32.totalorder %s1714_s12, %s2028_s1 }
  0x1c   : > { %p1427_p7 = scmp.ne.s32.totalorder %s1714_s12, %s1426_s16  ;;  %p1433_p12 = scmp.lt.s32.totalorder %s1431_s20, %s1426_s16 }
  0x1e   : > { %p1429_p9 = pnand %p1723_p8, %p1427_p7  ;;  %p1434_p13 = por %p1433_p12, %p1432_p11 }
  0x20   : > { %p1430_p10 = pneg %p1429_p9 }
  0x22   : > { %p1435_p1 = pnand %p1434_p13, %p1430_p10 }
  0x24   : > { %1438 = shalt.err (!%p1435_p1)
}
  0x25   : > { %s1439_s9 = scalar_lea.vmem %s262_s14, 64  ;;  %s1610_s10 = smov [#allocation5]  }
  0x26   : > { %p1440_p2 = scmp.ne.s32.totalorder %s262_s14, %s1439_s9  ;;  %s1444_s11 = sshll.u32 %s1610_s10, 4  ;;  %s1445_s11 = int_to_ptr.vmem [resolvable:$false] %s1444_s11 }
  0x27   : > { %s1446_s13 = scalar_lea.vmem %s1445_s11, 128  ;;  %p1447_p7 = scmp.lt.s32.totalorder %s262_s14, %s1445_s11 }
  0x28   : > { %p1442_p4 = pnand %p1440_p2, %p1723_p8  ;;  %p1448_p9 = scmp.lt.s32.totalorder %s1446_s13, %s1439_s9 }
  0x2a   : > { %p1443_p5 = pneg %p1442_p4  ;;  %p1449_p3 = por %p1448_p9, %p1447_p7 }
  0x2c   : > { %p1450_p0 = pnand %p1449_p3, %p1443_p5 }
  0x2e   : > { %1453 = shalt.err (!%p1450_p0)
}
  0x2f   : > { %1349 = dma.hbm_to_vmem [thread:$0]  (!%p1705_p6), %s1714_s12, 64, %s262_s14, %s1717_s15  }
  0x30   : > { %s1743_s16 = sadd.s32 4294967295, %s1608_s24   ;;  %s1187_s18 = sadd.s32 4294967294, %s1608_s24  }
  0x31   : > { %p46_p0 = scmp.ne.s32.totalorder %s1600_s22, %s1596_s21  ;;  %p2009_p3 = scmp.eq.s32.totalorder %s1743_s16, 0 }
  0x32   : > { %p190_p10 = scmp.eq.s32.totalorder %s1743_s16, 1  ;;  %p196_p11 = scmp.eq.s32.totalorder %s1187_s18, 1 }
  0x33   : > { %p1752_p12 = por %p2009_p3, %p46_p0  ;;  %p1188_p13 = scmp.ge.s32.totalorder %s1608_s24, 1 }
  0x34   : > { %p2031_p1 = scmp.ne.s32.totalorder %s1604_s23, %s1600_s22  ;;  %p1764_p4 = por %p196_p11, %p46_p0 }
  0x35   : > { %s2030_s19 = scalar_select %p1752_p12, 1, 0 }
  0x36   : > { %p1760_p2 = por %p190_p10, %p2031_p1  ;;  %p203_p5 = scmp.lt.s32.totalorder %s1608_s24, 3 }
  0x37   : > { %s2034_s14 = scalar_select %p1764_p4, 1, 0 }
  0x38   : > { %s2032_s12 = scalar_select %p1760_p2, 1, 0 }
  0x39   : > { %2035 = sst [smem:[#allocation20_spill]] %s2034_s14  ;;  %p1769_p7 = pnand %p1188_p13, %p203_p5 }
  0x3a   : > { %2033 = sst [smem:[#allocation19_spill]] %s2032_s12  ;;  %s1611_s26 = smov [#allocation8]  }
  0x3b   : > { %s2036_s20 = scalar_select %p1769_p7, 1, 0 }
  0x3c   : > { %s215_s27 = sshll.u32 %s1611_s26, 4  ;;  %p1339_p9 = pneg %p1769_p7  ;;  %s216_s27 = int_to_ptr.vmem [resolvable:$true] %s215_s27 }
  0x3d   : > { %s1779_s11 = scalar_lea.hbm %s2000_s0, %s1703_s7  ;;  %s236_s18 = scalar_lea.vmem [#allocation2], %s1700_s30 }
  0x3e   : > { %p1783_p0 = pnand %p1339_p9, %p2009_p3  ;;  %s243_s29 = sshll.u32 %s236_s18, 4  ;;  %s1788_s29 = int_to_ptr.vmem [resolvable:$true] %s243_s29 }
  0x3f   : > { %s1794_s28 = scalar_lea.hbm %s2002_s2, %s1703_s7  ;;  %s1465_s9 = scalar_lea.vmem %s216_s27, 768 }
  0x40   : > { %p1456_p10 = pneg %p1783_p0  ;;  %p1466_p11 = scmp.ne.s32.totalorder %s216_s27, %s1465_s9 }
  0x41   : > { %p1473_p5 = scmp.lt.s32.totalorder %s216_s27, %s216_s27  ;;  %p1474_p9 = scmp.lt.s32.totalorder %s1465_s9, %s1465_s9 }
  0x42   : > { %p1468_p13 = pnand %p1466_p11, %p1456_p10 }
  0x43   : > { %p1475_p3 = por %p1474_p9, %p1473_p5 }
  0x44   : > { %p1469_p1 = pneg %p1468_p13 }
  0x46   : > { %p1476_p4 = pnand %p1475_p3, %p1469_p1 }
  0x48   : > { %1479 = shalt.err (!%p1476_p4)
}
  0x49   : > { %s1612_s10 = smov 64   ;;  %s1613_s1 = smov 4  }
  0x4a   : > { %1342 = dma.hbm_to_vmem [thread:$0]  (!%p1783_p0), %s2004_s4, 768, %s216_s27, [#allocation9], %s1612_s10, %s1612_s10, %s1613_s1  }
  0x4b   : > { %s2038_s26 = sand.u32 1, %s1604_s23   ;;  %s1480_s24 = scalar_lea.hbm %s1779_s11, 64 }
  0x4c   : > { %s233_s25 = scalar_lea.sflag [#allocation3], %s2038_s26  ;;  %p1481_p10 = scmp.ne.s32.totalorder %s1779_s11, %s1480_s24 }
  0x4d   : > { %s1485_s21 = scalar_lea.hbm %s2000_s0, 128  ;;  %p1486_p11 = scmp.lt.s32.totalorder %s1779_s11, %s2000_s0 }
  0x4e   : > { %p1483_p3 = pnand %p1481_p10, %p1723_p8  ;;  %p1487_p13 = scmp.lt.s32.totalorder %s1485_s21, %s1480_s24 }
  0x50   : > { %p1484_p4 = pneg %p1483_p3  ;;  %p1488_p1 = por %p1487_p13, %p1486_p11 }
  0x52   : > { %p1489_p5 = pnand %p1488_p1, %p1484_p4 }
  0x54   : > { %1492 = shalt.err (!%p1489_p5)
}
  0x55   : > { %s1493_s27 = scalar_lea.vmem %s1788_s29, 64  ;;  %s1614_s13 = smov [#allocation2]  }
  0x56   : > { %p1494_p0 = scmp.ne.s32.totalorder %s1788_s29, %s1493_s27  ;;  %s1498_s14 = sshll.u32 %s1614_s13, 4  ;;  %s1499_s14 = int_to_ptr.vmem [resolvable:$false] %s1498_s14 }
  0x57   : > { %s1500_s10 = scalar_lea.vmem %s1499_s14, 128  ;;  %p1501_p3 = scmp.lt.s32.totalorder %s1788_s29, %s1499_s14 }
  0x58   : > { %p1496_p9 = pnand %p1494_p0, %p1723_p8  ;;  %p1502_p2 = scmp.lt.s32.totalorder %s1500_s10, %s1493_s27 }
  0x5a   : > { %p1497_p10 = pneg %p1496_p9  ;;  %p1503_p12 = por %p1502_p2, %p1501_p3 }
  0x5c   : > { %p1504_p7 = pnand %p1503_p12, %p1497_p10 }
  0x5e   : > { %1507 = shalt.err (!%p1504_p7)
}
  0x5f   : > { %1346 = dma.hbm_to_vmem [thread:$0]  (!%p1705_p6), %s1779_s11, 64, %s1788_s29, %s233_s25  }
  0x60   : > { %s272_s6 = scalar_lea.vmem [#allocation7], %s1700_s30  ;;  %s1508_s24 = scalar_lea.hbm %s1794_s28, 64 }
  0x61   : > { %s279_s21 = sshll.u32 %s272_s6, 4  ;;  %p1509_p4 = scmp.ne.s32.totalorder %s1794_s28, %s1508_s24  ;;  %s280_s21 = int_to_ptr.vmem [resolvable:$true] %s279_s21 }
  0x62   : > { %s1513_s7 = scalar_lea.hbm %s2002_s2, 128  ;;  %p1514_p12 = scmp.lt.s32.totalorder %s1794_s28, %s2002_s2 }
  0x63   : > { %p1511_p11 = pnand %p1509_p4, %p1723_p8  ;;  %p1515_p7 = scmp.lt.s32.totalorder %s1513_s7, %s1508_s24 }
  0x65   : > { %p1512_p2 = pneg %p1511_p11  ;;  %p1516_p13 = por %p1515_p7, %p1514_p12 }
  0x67   : > { %p1517_p1 = pnand %p1516_p13, %p1512_p2 }
  0x69   : > { %1520 = shalt.err (!%p1517_p1)
}
  0x6a   : > { %s1521_s25 = scalar_lea.vmem %s280_s21, 64  ;;  %s1615_s29 = smov [#allocation7]  }
  0x6b   : > { %p1522_p5 = scmp.ne.s32.totalorder %s280_s21, %s1521_s25  ;;  %s1526_s30 = sshll.u32 %s1615_s29, 4  ;;  %s1527_s30 = int_to_ptr.vmem [resolvable:$false] %s1526_s30 }
  0x6c   : > { %s1528_s11 = scalar_lea.vmem %s1527_s30, 128  ;;  %p1529_p10 = scmp.lt.s32.totalorder %s280_s21, %s1527_s30 }
  0x6d   : > { %p1524_p0 = pnand %p1522_p5, %p1723_p8  ;;  %p1530_p3 = scmp.lt.s32.totalorder %s1528_s11, %s1521_s25 }
  0x6f   : > { %p1525_p9 = pneg %p1524_p0  ;;  %p1531_p4 = por %p1530_p3, %p1529_p10 }
  0x71   : > { %p1532_p11 = pnand %p1531_p4, %p1525_p9 }
  0x73   : > { %1535 = shalt.err (!%p1532_p11)
}
  0x74   : > { %1352 = dma.hbm_to_vmem [thread:$0]  (!%p1705_p6), %s1794_s28, 64, %s280_s21, %s1717_s15  }
  0x75   : > { %p2039_p2 = scmp.ne.s32.totalorder %s2036_s20, 0 }
  0x76   : > { %s1846_s17 = sand.u32 (!%p2039_p2), 1, %s1600_s22   ;;  %p2040_p8 = scmp.ne.s32.totalorder (!%p2039_p2), %s2030_s19, 0 }
  0x77   : > { %294 = sbr.rel (%p2039_p2) target bundleno = 1308 (0x51c), region = 44  ;;  %s1849_s9 = sshll.u32 (!%p2039_p2), %s1846_s17, 2 }
  0x78   : > { %s297_s27 = scalar_lea.sflag (!%p2039_p2), [#allocation3], %s1846_s17  ;;  %s300_s13 = scalar_lea.vmem (!%p2039_p2), [#allocation2], %s1849_s9 }
  0x7c   : > { %1579 = dma.done.wait (%p2040_p8), %s297_s27, 64  }
  0x7d   : > { %1581 = vsyncadd (%p2040_p8), %s297_s27, 4294967232  ;;  %s305_s28 = sand.u32 1, %s1743_s16   ;;  %s309_s15 = scalar_lea.vmem [#allocation5], %s1849_s9 }
  0x7e   : > { %s306_s8 = scalar_lea.sflag [#allocation6], %s305_s28 }
  0x7f   : > { %1583 = dma.done.wait (%p2040_p8), %s306_s8, 128  }
  0x80   : > { %1585 = vsyncadd (%p2040_p8), %s306_s8, 4294967168  ;;  %s318_s20 = scalar_lea.vmem [#allocation7], %s1849_s9  ;;  %p2041_p6 = scmp.eq.s32.totalorder %s1743_s16, 0 }
  0x82   : > { %1587 = dma.done.wait (%p2041_p6), [#allocation9], 768   ;;  %p2042_p12 = pmov %p2041_p6 }
  0x83   : > { %v1616_v0 = vmov 0.0   ;;  %vm1617_vm0 = vmmov 0   ;;  %v1404_v1 = vld [vmem:[#allocation8 + $0x18] sm:$0xff]   ;;  %v1405_v2 = vld [vmem:[#allocation8 + $0x8] sm:$0xff]   ;;  %v1406_v3 = vld [vmem:[#allocation8 + $0x10] sm:$0xff]   ;;  %vm392_vm1 = vcmask 261120  }
  0x84   : > { %1589 = vsyncadd (%p2042_p12), [#allocation9], 4294966528  ;;  %1263 = vmatprep.subr.bf16.mxu1 %v1616_v0  ;;  %1255 = vmatprep.subr.bf16.mxu0 %v1616_v0  ;;  %v1407_v4 = vld [vmem:[#allocation8] sm:$0xff]   ;;  %v436_v5 = vld [vmem:[%s309_s15] sm:$0xf]  ;;  %vm584_vm2 = vcmask 64512  }
  0x85   : > { %1267 = vmatprep.mubr.msk.bf16.mxu1 %vm1617_vm0, %v1616_v0  ;;  %1259 = vmatprep.mubr.msk.bf16.mxu0 %vm1617_vm0, %v1616_v0  ;;  %v368_v6 = vld [vmem:[%s300_s13] sm:$0xf]  ;;  %s1618_s21 = smov 112   ;;  %s1619_s24 = smov 120   ;;  %v1409_v23 = vld [vmem:[#allocation8 + $0x20] sm:$0xff]   ;;  %vm646_vm3 = vcmask 1043456  }
  0x86   : > { %1264 = vmatpush3.bf16.msra.mxu1 %v1404_v1  ;;  %1256 = vmatpush3.bf16.msra.mxu0 %v1405_v2  ;;  %v1208_v7 = vld [vmem:[%s2005_s5 + $0x1] ss:$0 sm:$0xff]  ;;  %v1203_v8 = vld [vmem:[%s2005_s5] ss:$0 sm:$0xff]  ;;  %s1620_s12 = smov 104   ;;  %p364_p7 = scmp.lt.s32.totalorder %s1743_s16, 1 }
  0x87   : > { %1265 = vmatprep.subr.bf16.mxu1 %v1616_v0  ;;  %1257 = vmatprep.subr.bf16.mxu0 %v1616_v0  ;;  %v1408_v22 = vld [vmem:[#allocation8 + $0x28] sm:$0xff]   ;;  %v505_v24 = vld [vmem:[%s318_s20] sm:$0xf]  ;;  %s1621_s30 = smov 8   ;;  %s1622_s11 = smov 16   ;;  %vm1036_vm4 = vcmask 130048  }
  0x88   : > { %s365_s1 = scalar_select %p364_p7, %s1743_s16, 1  ;;  %v1213_v41 = vld [vmem:[%s2005_s5 + $0x2] ss:$0 sm:$0xff]  ;;  %vm1038_vm5 = vcmask 195584  }
  0x89   : > { %s1623_s9 = smov 24   ;;  %s1202_s27 = sshll.u32 %s1846_s17, 3 }
  0x8a   : > { %1266 = vmatpush3.bf16.msra.mxu1 %v1406_v3  ;;  %1258 = vmatpush3.bf16.msra.mxu0 %v1407_v4  ;;  %s366_s26 = scalar_lea.vmem %s2003_s3, %s365_s1  ;;  %s2043_s13 = sld [smem:[#allocation19_spill]] }
  0x8b   : > { %1279 = vmatprep.subr.bf16.mxu1 %v1616_v0  ;;  %1271 = vmatprep.subr.bf16.mxu0 %v1616_v0  ;;  %v1217_v34 = vld [vmem:[%s366_s26] ss:$0 sm:$0xff]  ;;  %s1227_s28 = sshll.u32 %s1743_s16, 7  ;;  %s363_s8 = scalar_lea.vmem [#allocation10], %s1202_s27 }
  0x8c   : > { %s1055_s15 = sshll.u32 %s363_s8, 4  ;;  %s2044_s14 = sld [smem:[#allocation22_spill]]  ;;  %s1056_s15 = int_to_ptr.vmem [resolvable:$true] %s1055_s15 }
  0x8d   : > { %1268 = vmatmul.mubr.msk.bf16.vlgmr.msra.gmra.mxu1 %vm392_vm1, %v436_v5  ;;  %1260 = vmatmul.mubr.msk.bf16.vlgmr.msra.gmra.mxu0 %vm392_vm1, %v368_v6  ;;  %s1042_s6 = scalar_lea.sflag [#allocation4], %s1846_s17  ;;  %s1624_s16 = smov [#allocation10]  }
  0x8e   : > { %1281 = vmatprep.mubr.msk.bf16.mxu1 %vm1617_vm0, %v1616_v0  ;;  %1275 = vmatprep.mubr.msk.bf16.mxu0 %vm1617_vm0, %v1616_v0 }
  0x8f   : > { %1272 = vmatpush3.bf16.msra.mxu0 %v1408_v22 }
  0x90   : > { %1273 = vmatprep.subr.bf16.mxu0 %v1616_v0  ;;  %p2045_p1 = scmp.ne.s32.totalorder %s2043_s13, 0 }
  0x92   : > { %s1962_s10 = scalar_lea.hbm %s2044_s14, %s1227_s28 }
  0x93   : > { %1274 = vmatpush3.bf16.msra.mxu0 %v1409_v23 }
  0x94   : > { %1285 = vmatprep.subr.bf16.mxu0 %v1616_v0 }
  0x96   : > { %1276 = vmatmul.mubr.msk.bf16.vlgmr.msra.gmra.mxu0 %vm392_vm1, %v505_v24 }
  0x97   : > { %1287 = vmatprep.mubr.msk.bf16.mxu0 %vm1617_vm0, %v1616_v0 }
 0x14d   : > { %v499_v9 = vpop.f32.mrf.mxu1  ;;  %v430_v11 = vpop.f32.mrf.mxu0 }
 0x14e   : > { %v500_v10 = vadd.f32 %v1208_v7, %v499_v9  ;;  %v431_v12 = vadd.f32 %v1203_v8, %v430_v11 }
 0x14f   : > { %v1269_v13 = vpop.f32.mrf.mxu1  ;;  %v1261_v15 = vpop.f32.mrf.mxu0 }
 0x150   : > { %v575_v14 = vpack.c.bf16 %v500_v10, %v500_v10  ;;  %v574_v17 = vpack.c.bf16 %v431_v12, %v431_v12 }
 0x151   : > { %v502_v16 = vpop.f32.mrf.mxu1  ;;  %v433_v18 = vpop.f32.mrf.mxu0 }
 0x152   : > { %805 = vrot.lane.b32.xlu1 %v575_v14, %s1618_s21  ;;  %694 = vrot.lane.b32.xlu0 %v575_v14, %s1619_s24  ;;  %v589_v19 = vsel %vm584_vm2, %v575_v14, 0 }
 0x153   : > { %v1270_v20 = vpop.f32.mrf.mxu1  ;;  %1280 = vmatpush3.bf16.xpose.msra.mxu1 %v589_v19  ;;  %v1262_v21 = vpop.f32.mrf.mxu0 }
 0x154   : > { %1291 = vmatprep.subr.bf16.mxu1 %v1616_v0 }
 0x156   : > { %803 = vrot.lane.b32.xlu1 %v574_v17, %s1618_s21  ;;  %691 = vrot.lane.b32.xlu0 %v574_v17, %s1619_s24  ;;  %v568_v42 = vpop.f32.mrf.mxu0 }
 0x157   : > { %v569_v43 = vadd.f32 %v1213_v41, %v568_v42 }
 0x158   : > { %v1277_v44 = vpop.f32.mrf.mxu0 }
 0x159   : > { %v576_v45 = vpack.c.bf16 %v569_v43, %v569_v43 }
 0x15a   : > { %913 = vrot.lane.b32.xlu1 %v574_v17, %s1620_s12  ;;  %915 = vrot.lane.b32.xlu0 %v575_v14, %s1620_s12  ;;  %v571_v46 = vpop.f32.mrf.mxu0 }
 0x15b   : > { %1282 = vmatmul.mubr.msk.bf16.vlgmr.msra.gmra.mxu1 %vm584_vm2, %v574_v17  ;;  %v648_v47 = vsel %vm646_vm3, %v576_v45, 0 }
 0x15c   : > { %1293 = vmatprep.mubr.msk.bf16.mxu1 %vm1617_vm0, %v1616_v0  ;;  %v1278_v48 = vpop.f32.mrf.mxu0  ;;  %1286 = vmatpush3.bf16.msra.mxu0 %v648_v47 }
 0x15d   : > { %1297 = vmatprep.subr.bf16.mxu0 %v1616_v0 }
 0x1c4   : > { %v695_v25 = vpop.permute.xlu0 %694  ;;  %v806_v27 = vpop.permute.xlu1 %805 }
 0x1c5   : > { %v700_v26 = vsel %vm584_vm2, %v695_v25, 0  ;;  %v811_v29 = vsel %vm584_vm2, %v806_v27, 0 }
 0x1c6   : > { %1292 = vmatpush3.bf16.xpose.msra.mxu1 %v700_v26 }
 0x1c7   : > { %1303 = vmatprep.subr.bf16.mxu1 %v1616_v0 }
 0x1c8   : > { %v692_v28 = vpop.permute.xlu0 %691  ;;  %v804_v31 = vpop.permute.xlu1 %803 }
 0x1cc   : > { %v916_v30 = vpop.permute.xlu0 %915  ;;  %v914_v33 = vpop.permute.xlu1 %913 }
 0x1cd   : > { %1294 = vmatmul.mubr.msk.bf16.vlgmr.msra.gmra.mxu1 %vm584_vm2, %v692_v28  ;;  %v921_v32 = vsel %vm584_vm2, %v916_v30, 0 }
 0x1ce   : > { %1304 = vmatpush3.bf16.xpose.msra.mxu1 %v811_v29  ;;  %1305 = vmatprep.mubr.msk.bf16.mxu1 %vm1617_vm0, %v1616_v0 }
 0x1cf   : > { %1315 = vmatprep.subr.bf16.mxu1 %v1616_v0 }
 0x1d5   : > { %1306 = vmatmul.mubr.msk.bf16.vlgmr.msra.gmra.mxu1 %vm584_vm2, %v804_v31 }
 0x1d6   : > { %1316 = vmatpush3.bf16.xpose.msra.mxu1 %v921_v32  ;;  %1317 = vmatprep.mubr.msk.bf16.mxu1 %vm1617_vm0, %v1616_v0 }
 0x1dd   : > { %1318 = vmatmul.mubr.msk.bf16.vlgmr.msra.gmra.mxu1 %vm584_vm2, %v914_v33 }
 0x21b   : > { %v625_v35 = vpop.f32.mrf.mxu1 }
 0x21c   : > { %v626_v36 = vadd.f32 %v1217_v34, %v625_v35 }
 0x21d   : > { %v1283_v37 = vpop.f32.mrf.mxu1 }
 0x21e   : > { %v631_v38 = vsel %vm584_vm2, %v626_v36, -inf }
 0x21f   : > { %632 = vmax.xlane.f32.xlu0 %v631_v38  ;;  %v628_v39 = vpop.f32.mrf.mxu1 }
 0x221   : > { %v1284_v40 = vpop.f32.mrf.mxu1 }
 0x28d   : > { %v736_v49 = vpop.f32.mrf.mxu1 }
 0x28e   : > { %v737_v50 = vadd.f32 %v1217_v34, %v736_v49 }
 0x28f   : > { %v1295_v51 = vpop.f32.mrf.mxu1 }
 0x290   : > { %v742_v52 = vsel %vm584_vm2, %v737_v50, -inf }
 0x291   : > { %743 = vmax.xlane.f32.xlu1 %v742_v52  ;;  %v739_v53 = vpop.f32.mrf.mxu1 }
 0x293   : > { %v1296_v54 = vpop.f32.mrf.mxu1 }
 0x295   : > { %v847_v55 = vpop.f32.mrf.mxu1 }
 0x296   : > { %v848_v56 = vadd.f32 %v1217_v34, %v847_v55 }
 0x297   : > { %v1307_v57 = vpop.f32.mrf.mxu1 }
 0x298   : > { %v853_v58 = vsel %vm584_vm2, %v848_v56, -inf }
 0x299   : > { %854 = vmax.xlane.f32.xlu0 %v853_v58  ;;  %v850_v59 = vpop.f32.mrf.mxu1 }
 0x29b   : > { %v1308_v60 = vpop.f32.mrf.mxu1 }
 0x29d   : > { %v957_v61 = vpop.f32.mrf.mxu1 }
 0x29e   : > { %v958_v62 = vadd.f32 %v1217_v34, %v957_v61 }
 0x29f   : > { %v1319_v63 = vpop.f32.mrf.mxu1 }
 0x2a0   : > { %v963_v1 = vsel %vm584_vm2, %v958_v62, -inf }
 0x2a1   : > { %964 = vmax.xlane.f32.xlu0 %v963_v1  ;;  %v960_v2 = vpop.f32.mrf.mxu1 }
 0x2a3   : > { %v1320_v3 = vpop.f32.mrf.mxu1 }
 0x2a8   : > { %v633_v4 = vpop.xlane.xlu0 %632 }
 0x2a9   : > { %v634_v5 = vsub.f32 %v626_v36, %v633_v4 }
 0x2ab   : > { %v635_v6 = vmul.f32 1.442695, %v634_v5 }
 0x2ad   : > { %1410 = vpow2.f32 %v635_v6 }
 0x2ba   : > { %v1411_v7 = vpop.eup %1410 }
 0x2bb   : > { %v637_v8 = vsel %vm584_vm2, %v1411_v7, 0.0 }
 0x2bc   : > { %638 = vadd.xlane.f32.xlu1 %v637_v8 }
 0x2cd   : > { %755 = vrot.lane.b32.xlu1 %v576_v45, %s1619_s24  ;;  %s1540_s24 = sshll.u32 %s1624_s16, 4  ;;  %s1541_s24 = int_to_ptr.vmem [resolvable:$false] %s1540_s24 }
 0x2ce   : > { %p1543_p9 = scmp.lt.s32.totalorder %s1056_s15, %s1541_s24 }
 0x31a   : > { %v744_v9 = vpop.xlane.xlu1 %743 }
 0x31b   : > { %v745_v10 = vsub.f32 %v737_v50, %v744_v9 }
 0x31d   : > { %v746_v11 = vmul.f32 1.442695, %v745_v10 }
 0x31f   : > { %1412 = vpow2.f32 %v746_v11 }
 0x322   : > { %v855_v12 = vpop.xlane.xlu0 %854 }
 0x323   : > { %v856_v13 = vsub.f32 %v848_v56, %v855_v12 }
 0x325   : > { %v857_v14 = vmul.f32 1.442695, %v856_v13 }
 0x327   : > { %1414 = vpow2.f32 %v857_v14 }
 0x32a   : > { %v965_v15 = vpop.xlane.xlu0 %964 }
 0x32b   : > { %v966_v16 = vsub.f32 %v958_v62, %v965_v15 }
 0x32c   : > { %v1413_v17 = vpop.eup %1412 }
 0x32d   : > { %v967_v18 = vmul.f32 1.442695, %v966_v16  ;;  %v748_v19 = vsel %vm584_vm2, %v1413_v17, 0.0 }
 0x32e   : > { %749 = vadd.xlane.f32.xlu0 %v748_v19 }
 0x32f   : > { %1416 = vpow2.f32 %v967_v18 }
 0x334   : > { %v1415_v20 = vpop.eup %1414 }
 0x335   : > { %v859_v21 = vsel %vm584_vm2, %v1415_v20, 0.0 }
 0x336   : > { %860 = vadd.xlane.f32.xlu1 %v859_v21 }
 0x33c   : > { %v1417_v22 = vpop.eup %1416 }
 0x33d   : > { %v969_v23 = vsel %vm584_vm2, %v1417_v22, 0.0 }
 0x33e   : > { %970 = vadd.xlane.f32.xlu0 %v969_v23 }
 0x345   : > { %v639_v24 = vpop.xlane.xlu1 %638 }
 0x346   : > { %1418 = vrcp.f32 %v639_v24 }
 0x347   : > { %975 = vrot.lane.b32.xlu1 %v576_v45, %s1620_s12  ;;  %s1542_s12 = scalar_lea.vmem %s1541_s24, 256 }
 0x349   : > { %v756_v26 = vpop.permute.xlu1 %755 }
 0x34a   : > { %v761_v29 = vsel %vm646_vm3, %v756_v26, 0 }
 0x353   : > { %v1419_v25 = vpop.eup %1418 }
 0x354   : > { %865 = vrot.lane.b32.xlu0 %v576_v45, %s1618_s21  ;;  %v641_v27 = vmul.f32 %v1419_v25, %v1411_v7  ;;  %s1536_s21 = scalar_lea.vmem %s1056_s15, 128 }
 0x355   : > { %p1537_p13 = scmp.ne.s32.totalorder %s1056_s15, %s1536_s21  ;;  %p1544_p10 = scmp.lt.s32.totalorder %s1542_s12, %s1536_s21 }
 0x356   : > { %v642_v28 = vpack.c.bf16 %v641_v27, %v641_v27 }
 0x357   : > { %p1538_p5 = pnand %p1537_p13, %p2045_p1  ;;  %p1545_p3 = por %p1544_p10, %p1543_p9 }
 0x358   : > { %1288 = vmatmul.mubr.msk.bf16.vlgmr.msra.gmra.mxu0 %vm584_vm2, %v642_v28 }
 0x359   : > { %1298 = vmatpush3.bf16.msra.mxu0 %v761_v29  ;;  %1299 = vmatprep.mubr.msk.bf16.mxu0 %vm1617_vm0, %v1616_v0  ;;  %p1539_p0 = pneg %p1538_p5 }
 0x35a   : > { %1309 = vmatprep.subr.bf16.mxu0 %v1616_v0 }
 0x35b   : > { %p1546_p4 = pnand %p1545_p3, %p1539_p0 }
 0x3b7   : > { %v750_v30 = vpop.xlane.xlu0 %749 }
 0x3b8   : > { %1420 = vrcp.f32 %v750_v30 }
 0x3bf   : > { %v861_v31 = vpop.xlane.xlu1 %860 }
 0x3c0   : > { %1422 = vrcp.f32 %v861_v31 }
 0x3c3   : > { %v976_v40 = vpop.permute.xlu1 %975 }
 0x3c4   : > { %v981_v42 = vsel %vm646_vm3, %v976_v40, 0 }
 0x3c5   : > { %v1421_v32 = vpop.eup %1420 }
 0x3c6   : > { %v752_v33 = vmul.f32 %v1421_v32, %v1413_v17 }
 0x3c7   : > { %v971_v34 = vpop.xlane.xlu0 %970 }
 0x3c8   : > { %1424 = vrcp.f32 %v971_v34  ;;  %v753_v35 = vpack.c.bf16 %v752_v33, %v752_v33 }
 0x3ca   : > { %1300 = vmatmul.mubr.msk.bf16.vlgmr.msra.gmra.mxu0 %vm584_vm2, %v753_v35 }
 0x3cb   : > { %v866_v36 = vpop.permute.xlu0 %865  ;;  %1311 = vmatprep.mubr.msk.bf16.mxu0 %vm1617_vm0, %v1616_v0 }
 0x3cc   : > { %v871_v37 = vsel %vm646_vm3, %v866_v36, 0 }
 0x3cd   : > { %v1423_v38 = vpop.eup %1422  ;;  %1310 = vmatpush3.bf16.msra.mxu0 %v871_v37 }
 0x3ce   : > { %1321 = vmatprep.subr.bf16.mxu0 %v1616_v0  ;;  %v863_v39 = vmul.f32 %v1423_v38, %v1415_v20 }
 0x3d0   : > { %v864_v41 = vpack.c.bf16 %v863_v39, %v863_v39 }
 0x3d2   : > { %1312 = vmatmul.mubr.msk.bf16.vlgmr.msra.gmra.mxu0 %vm584_vm2, %v864_v41 }
 0x3d3   : > { %1322 = vmatpush3.bf16.msra.mxu0 %v981_v42  ;;  %1323 = vmatprep.mubr.msk.bf16.mxu0 %vm1617_vm0, %v1616_v0 }
 0x3d5   : > { %v1425_v43 = vpop.eup %1424 }
 0x3d6   : > { %v973_v44 = vmul.f32 %v1425_v43, %v1417_v22 }
 0x3d8   : > { %v974_v45 = vpack.c.bf16 %v973_v44, %v973_v44 }
 0x3da   : > { %1324 = vmatmul.mubr.msk.bf16.vlgmr.msra.gmra.mxu0 %vm584_vm2, %v974_v45 }
 0x418   : > { %v684_v46 = vpop.f32.mrf.mxu0 }
 0x41a   : > { %v1289_v47 = vpop.f32.mrf.mxu0 }
 0x41c   : > { %v687_v48 = vpop.f32.mrf.mxu0 }
 0x41e   : > { %v1290_v49 = vpop.f32.mrf.mxu0 }
 0x48a   : > { %v797_v50 = vpop.f32.mrf.mxu0 }
 0x48b   : > { %1024 = vrot.lane.b32.xlu1 %v797_v50, %s1621_s30 }
 0x48c   : > { %v1301_v51 = vpop.f32.mrf.mxu0 }
 0x48e   : > { %v800_v52 = vpop.f32.mrf.mxu0 }
 0x490   : > { %v1302_v53 = vpop.f32.mrf.mxu0 }
 0x492   : > { %v907_v54 = vpop.f32.mrf.mxu0 }
 0x493   : > { %1028 = vrot.lane.b32.xlu0 %v907_v54, %s1622_s11 }
 0x494   : > { %v1313_v0 = vpop.f32.mrf.mxu0 }
 0x496   : > { %v910_v55 = vpop.f32.mrf.mxu0 }
 0x498   : > { %v1314_v56 = vpop.f32.mrf.mxu0 }
 0x49a   : > { %v1017_v57 = vpop.f32.mrf.mxu0 }
 0x49b   : > { %1032 = vrot.lane.b32.xlu1 %v1017_v57, %s1623_s9 }
 0x49c   : > { %v1325_v58 = vpop.f32.mrf.mxu0 }
 0x49e   : > { %v1020_v59 = vpop.f32.mrf.mxu0 }
 0x4a0   : > { %v1326_v60 = vpop.f32.mrf.mxu0 }
 0x4fd   : > { %v1025_v61 = vpop.permute.xlu1 %1024 }
 0x4fe   : > { %v1035_v63 = vsel %vm584_vm2, %v684_v46, %v1025_v61 }
 0x505   : > { %v1029_v62 = vpop.permute.xlu0 %1028 }
 0x506   : > { %v1037_v1 = vsel %vm1036_vm4, %v1035_v63, %v1029_v62 }
 0x50d   : > { %v1033_v2 = vpop.permute.xlu1 %1032 }
 0x50e   : > { %v1039_v3 = vsel %vm1038_vm5, %v1037_v1, %v1033_v2 }
 0x50f   : > { %1040 = vst.msk [vmem:[%s363_s8] sm:$0xff] %vm392_vm1, %v1039_v3 }
 0x510   : > { %1549 = shalt.err (!%p1546_p4)
}
 0x511   : > { %s1550_s1 = scalar_lea.hbm %s1962_s10, 128  ;;  %s1554_s18 = scalar_lea.hbm %s2044_s14, 256 }
 0x512   : > { %p1551_p11 = scmp.ne.s32.totalorder %s1962_s10, %s1550_s1  ;;  %p1555_p6 = scmp.lt.s32.totalorder %s1962_s10, %s2044_s14 }
 0x513   : > { %p1556_p12 = scmp.lt.s32.totalorder %s1554_s18, %s1550_s1 }
 0x514   : > { %p1552_p2 = pnand %p1551_p11, %p2045_p1 }
 0x515   : > { %p1557_p7 = por %p1556_p12, %p1555_p6 }
 0x516   : > { %p1553_p8 = pneg %p1552_p2 }
 0x518   : > { %p1558_p13 = pnand %p1557_p7, %p1553_p8 }
 0x51a   : > { %1561 = shalt.err (!%p1558_p13)
}
 0x51b   : > { %1337 = dma.vmem_to_hbm [thread:$0]  (%p2045_p1), %s1056_s15, 128, %s1962_s10, %s1042_s6  }
 0x51c PF: > { %s2046_s29 = sld [smem:[#allocation15_spill]] }
 0x51d   : > { %s2047_s30 = sld [smem:[#allocation20_spill]] }
 0x51e   : > { %s2048_s11 = sld [smem:[#allocation16_spill]] }
 0x522   : > { %s1067_s9 = sand.u32 1, %s2046_s29  }
 0x523   : > { %p2049_p5 = scmp.ne.s32.totalorder %s2047_s30, 0  ;;  %s1068_s27 = scalar_lea.sflag [#allocation4], %s1067_s9 }
 0x524   : > { %p2050_p0 = scmp.ge.s32.totalorder %s2048_s11, 2 }
 0x526   : > { %p1354_p9 = pnand %p2050_p0, %p2049_p5 }
 0x528   : > { %p1355_p10 = pneg %p1354_p9 }
 0x52a   : > { %1591 = dma.done.wait (%p1355_p10), %s1068_s27, 128  }
 0x52b   : > { %1593 = vsyncadd (%p1355_p10), %s1068_s27, 4294967168  ;;  %s2051_s24 = sld [smem:[#allocation17_spill]]  ;;  %s2053_s21 = smov %s1600_s22 }
 0x52c   : > { %s2052_s28 = sld [smem:[#allocation18_spill]]  ;;  %s2054_s22 = smov %s1604_s23 }
 0x531   : > { %p23_p3 = scmp.ge.s32.totalorder %s2051_s24, 4  }
 0x532   : > { %s2055_s23 = smov %s2052_s28 }
 0x533   :  { %25 = sbr.rel (!%p23_p3) target bundleno = 11 (0xb), region = 124 }
 0x538   :  { %1073 = vsyncpa [#allocation3], 1 }
 0x539   :  { %1075 = vsyncpa [#allocation3 + $0x1], 1 }
 0x53a   :  { %1076 = vsyncpa [#allocation6], 1 }
 0x53b   :  { %1078 = vsyncpa [#allocation6 + $0x1], 1 }
 0x53c   :  { %1079 = vsyncpa [#allocation9], 1 }
 0x53d   :  { %1080 = vsyncpa [#allocation4], 1 }
 0x53e   :  { %1082 = vsyncpa [#allocation4 + $0x1], 1 }

</bundles_post_ra>
